<compile_context>
chip_gen: v7x
topology: tpu7x:2x2x1
jax: 0.10.0
libtpu: 0.0.40
codegen_flags: <defaults>
</compile_context>

<pallas_src>
import jax
import jax.numpy as jnp
from jax.experimental import pallas as pl
from jax.experimental.pallas import tpu as pltpu


def _round_up(v, m):
    return (v + m - 1) // m * m


def gazenet_kernel(x_ref, w1_ref, b1_ref, w2_ref, b2_ref, o_ref):
    # x: [tile_b, K_pad], w1: [K_pad, H_pad], b1: [1, H_pad],
    # w2: [H_pad, N_pad], b2: [1, N_pad], o: [tile_b, N_pad]
    h = jnp.dot(x_ref[...], w1_ref[...], preferred_element_type=jnp.float32)
    h = h + b1_ref[...]  # bias broadcast over batch (f32)
    # torch.nn.Sigmoid written as 0.5*(tanh(h/2)+1): mathematically identical,
    # tanh issues on the EUP slot so there is no f32 divide on the VALU.
    h = 0.5 * (jnp.tanh(0.5 * h) + 1.0)
    y = jnp.dot(h.astype(w2_ref.dtype), w2_ref[...],
                preferred_element_type=jnp.float32)
    o_ref[...] = (y + b2_ref[...]).astype(o_ref.dtype)


def gazenet_forward(x, w1, b1, w2, b2, *, tile_b=512, matmul_dtype=None):
    """Fused GazeNet forward pass.

    x:  [B, 14]    w1: [14, 200]   b1: [200] or [1, 200]
    w2: [200, 2]   b2: [2]  or [1, 2]
    matmul_dtype: pass jnp.bfloat16 on v6e/v7x to halve HBM traffic and double
                  MXU throughput for the matmul operands (f32 accumulation kept).
    """
    x = jnp.asarray(x, jnp.float32)
    B, K = x.shape
    H = w1.shape[1]
    N = w2.shape[1]
    b1 = jnp.asarray(b1, jnp.float32).reshape(1, H)
    b2 = jnp.asarray(b2, jnp.float32).reshape(1, N)

    # Pad feature dims to vreg-friendly sizes (zero pad is mathematically inert).
    K_pad = _round_up(K, 8)      # 14 -> 16 : sublane-aligned w1 / lane-aligned x tail
    H_pad = _round_up(H, 128)    # 200 -> 256: lane-dense hidden, MXU-aligned
    N_pad = _round_up(N, 128)    # 2 -> 128 : lane-dense output store (no vst.msk)

    # Batch tile: must be a sublane multiple; clamp for small batches.
    tile_b = max(8, min(_round_up(tile_b, 8), _round_up(B, 8)))
    B_pad = _round_up(B, tile_b)

    x_p = jnp.pad(x, ((0, B_pad - B), (0, K_pad - K)))
    w1_p = jnp.pad(jnp.asarray(w1, jnp.float32), ((0, K_pad - K), (0, H_pad - H)))
    b1_p = jnp.pad(b1, ((0, 0), (0, H_pad - H)))
    w2_p = jnp.pad(jnp.asarray(w2, jnp.float32), ((0, H_pad - H), (0, N_pad - N)))
    b2_p = jnp.pad(b2, ((0, 0), (0, N_pad - N)))

    if matmul_dtype is not None:
        # Cast the matmul operands only; bias add / sigmoid stay f32.
        x_p = x_p.astype(matmul_dtype)
        w1_p = w1_p.astype(matmul_dtype)
        w2_p = w2_p.astype(matmul_dtype)

    grid = (pl.cdiv(B_pad, tile_b),)

    out_pad = pl.pallas_call(
        gazenet_kernel,
        out_shape=jax.ShapeDtypeStruct((B_pad, N_pad), jnp.float32),
        grid=grid,
        in_specs=[
            pl.BlockSpec((tile_b, K_pad), lambda i: (i, 0)),   # x: streamed / double-buffered
            pl.BlockSpec((K_pad, H_pad), lambda i: (0, 0)),    # w1: VMEM-resident
            pl.BlockSpec((1, H_pad), lambda i: (0, 0)),        # b1: VMEM-resident
            pl.BlockSpec((H_pad, N_pad), lambda i: (0, 0)),    # w2: VMEM-resident
            pl.BlockSpec((1, N_pad), lambda i: (0, 0)),        # b2: VMEM-resident
        ],
        out_specs=pl.BlockSpec((tile_b, N_pad), lambda i: (i, 0)),
        compiler_params=pltpu.CompilerParams(
            dimension_semantics=("parallel",),   # megacore sharding on v7x
        ),
    )(x_p, w1_p, b1_p, w2_p, b2_p)

    # Undo batch / lane padding.
    return out_pad[:B, :N]


def init_params(key, in_dim=14, hidden=200, out_dim=2):
    # Deterministic synthetic init mimicking torch.nn.Linear's U(-1/sqrt(fan_in), 1/sqrt(fan_in)).
    k1, k2, k3, k4 = jax.random.split(key, 4)
    bound1 = 1.0 / jnp.sqrt(in_dim)
    bound2 = 1.0 / jnp.sqrt(hidden)
    w1 = jax.random.uniform(k1, (in_dim, hidden), jnp.float32, -bound1, bound1)
    b1 = jax.random.uniform(k2, (1, hidden), jnp.float32, -bound1, bound1)
    w2 = jax.random.uniform(k3, (hidden, out_dim), jnp.float32, -bound2, bound2)
    b2 = jax.random.uniform(k4, (1, out_dim), jnp.float32, -bound2, bound2)
    return w1, b1, w2, b2


if __name__ == "__main__":
    key = jax.random.PRNGKey(0)
    kx, kp = jax.random.split(key)

    # Small demo batch; non-multiple of the tile to exercise padding + a 2-step grid.
    # (For real use this kernel pays off at large batch; keep plain jnp for B~8.)
    B = 200
    x = jax.random.normal(kx, (B, 14), jnp.float32)
    w1, b1, w2, b2 = init_params(kp)

    out = gazenet_forward(x, w1, b1, w2, b2, tile_b=128)
    out = jax.block_until_ready(out)

    # Pure-JAX reference check (exact sigmoid formulation).
    ref = jnp.dot(1.0 / (1.0 + jnp.exp(-(jnp.dot(x, w1) + b1))), w2) + b2
    assert out.shape == (B, 2)
    assert jnp.allclose(out, ref, atol=1e-4, rtol=1e-4)

    print("KERNEL_OK")
</pallas_src>

<mosaic_0001>
module attributes {stable_mosaic.version = 11 : i64} {
  func.func @gazenet_kernel(%arg0: i32, %arg1: memref<128x16xf32, #tpu.memory_space<vmem>>, %arg2: memref<16x256xf32, #tpu.memory_space<vmem>>, %arg3: memref<1x256xf32, #tpu.memory_space<vmem>>, %arg4: memref<256x128xf32, #tpu.memory_space<vmem>>, %arg5: memref<1x128xf32, #tpu.memory_space<vmem>>, %arg6: memref<128x128xf32, #tpu.memory_space<vmem>>) attributes {dimension_semantics = [#tpu.dimension_semantics<parallel>], iteration_bounds = array<i64: 2>, scalar_prefetch = 0 : i64, scratch_operands = 0 : i64, tpu.core_type = #tpu.core_type<tc>, window_params = [{transform_indices = @transform_0, window_bounds = array<i64: 128, 16>}, {pipeline_mode = #tpu.pipeline_mode<synchronous>, transform_indices = @transform_1, window_bounds = array<i64: 16, 256>}, {pipeline_mode = #tpu.pipeline_mode<synchronous>, transform_indices = @transform_2, window_bounds = array<i64: 1, 256>}, {pipeline_mode = #tpu.pipeline_mode<synchronous>, transform_indices = @transform_3, window_bounds = array<i64: 256, 128>}, {pipeline_mode = #tpu.pipeline_mode<synchronous>, transform_indices = @transform_4, window_bounds = array<i64: 1, 128>}, {transform_indices = @transform_5, window_bounds = array<i64: 128, 128>}]} {
    %c0 = arith.constant 0 : index
    %c0_0 = arith.constant 0 : index
    %0 = vector.load %arg1[%c0, %c0_0] : memref<128x16xf32, #tpu.memory_space<vmem>>, vector<128x16xf32>
    %c0_1 = arith.constant 0 : index
    %c0_2 = arith.constant 0 : index
    %1 = vector.load %arg2[%c0_1, %c0_2] : memref<16x256xf32, #tpu.memory_space<vmem>>, vector<16x256xf32>
    %cst = arith.constant dense<0.000000e+00> : vector<128x256xf32>
    %2 = tpu.matmul %0, %1, %cst {dimension_numbers = #tpu.dot_dimension_numbers<[1], [0], [0], [1], [0, 0, 1, 1], [], []>} : vector<128x16xf32>, vector<16x256xf32>, vector<128x256xf32> -> vector<128x256xf32>
    %c0_3 = arith.constant 0 : index
    %c0_4 = arith.constant 0 : index
    %3 = vector.load %arg3[%c0_3, %c0_4] : memref<1x256xf32, #tpu.memory_space<vmem>>, vector<1x256xf32>
    %4 = vector.broadcast %3 : vector<1x256xf32> to vector<128x256xf32>
    %5 = arith.addf %2, %4 : vector<128x256xf32>
    %cst_5 = arith.constant 5.000000e-01 : f32
    %6 = vector.broadcast %cst_5 : f32 to vector<128x256xf32>
    %7 = arith.mulf %6, %5 : vector<128x256xf32>
    %8 = math.tanh %7 : vector<128x256xf32>
    %cst_6 = arith.constant 1.000000e+00 : f32
    %9 = vector.broadcast %cst_6 : f32 to vector<128x256xf32>
    %10 = arith.addf %8, %9 : vector<128x256xf32>
    %cst_7 = arith.constant 5.000000e-01 : f32
    %11 = vector.broadcast %cst_7 : f32 to vector<128x256xf32>
    %12 = arith.mulf %11, %10 : vector<128x256xf32>
    %c0_8 = arith.constant 0 : index
    %c0_9 = arith.constant 0 : index
    %13 = vector.load %arg4[%c0_8, %c0_9] : memref<256x128xf32, #tpu.memory_space<vmem>>, vector<256x128xf32>
    %cst_10 = arith.constant dense<0.000000e+00> : vector<128x128xf32>
    %14 = tpu.matmul %12, %13, %cst_10 {dimension_numbers = #tpu.dot_dimension_numbers<[1], [0], [0], [1], [0, 0, 1, 1], [], []>} : vector<128x256xf32>, vector<256x128xf32>, vector<128x128xf32> -> vector<128x128xf32>
    %c0_11 = arith.constant 0 : index
    %c0_12 = arith.constant 0 : index
    %15 = vector.load %arg5[%c0_11, %c0_12] : memref<1x128xf32, #tpu.memory_space<vmem>>, vector<1x128xf32>
    %16 = vector.broadcast %15 : vector<1x128xf32> to vector<128x128xf32>
    %17 = arith.addf %14, %16 : vector<128x128xf32>
    %c0_13 = arith.constant 0 : index
    %c0_14 = arith.constant 0 : index
    %18 = vector.load %arg6[%c0_13, %c0_14] : memref<128x128xf32, #tpu.memory_space<vmem>>, vector<128x128xf32>
    tpu.vector_store %arg6[%c0_13, %c0_14], %17 {strides = array<i32>} : memref<128x128xf32, #tpu.memory_space<vmem>>, vector<128x128xf32>,
    return
  }
  func.func @transform_0(%arg0: i32) -> (i32, i32) {
    %c0_i32 = arith.constant 0 : i32
    %c0_i32_0 = arith.constant 0 : i32
    return %arg0, %c0_i32 : i32, i32
  }
  func.func @transform_1(%arg0: i32) -> (i32, i32) {
    %c0_i32 = arith.constant 0 : i32
    %c0_i32_0 = arith.constant 0 : i32
    %c0_i32_1 = arith.constant 0 : i32
    return %c0_i32, %c0_i32_0 : i32, i32
  }
  func.func @transform_2(%arg0: i32) -> (i32, i32) {
    %c0_i32 = arith.constant 0 : i32
    %c0_i32_0 = arith.constant 0 : i32
    %c0_i32_1 = arith.constant 0 : i32
    return %c0_i32, %c0_i32_0 : i32, i32
  }
  func.func @transform_3(%arg0: i32) -> (i32, i32) {
    %c0_i32 = arith.constant 0 : i32
    %c0_i32_0 = arith.constant 0 : i32
    %c0_i32_1 = arith.constant 0 : i32
    return %c0_i32, %c0_i32_0 : i32, i32
  }
  func.func @transform_4(%arg0: i32) -> (i32, i32) {
    %c0_i32 = arith.constant 0 : i32
    %c0_i32_0 = arith.constant 0 : i32
    %c0_i32_1 = arith.constant 0 : i32
    return %c0_i32, %c0_i32_0 : i32, i32
  }
  func.func @transform_5(%arg0: i32) -> (i32, i32) {
    %c0_i32 = arith.constant 0 : i32
    %c0_i32_0 = arith.constant 0 : i32
    return %arg0, %c0_i32 : i32, i32
  }
}

</mosaic_0001>

<bundles_post_ra>
// kernel: tpu_custom_call.1
= control target key start
LH: loop header
LB: loop body
LE: loop exit
PB: predicated region body
PF: predicated region fallthrough
CT: control target
= control target key end

     0   :  { %10 = vsyncpa [#allocation3], 0  ;;  %s1581_s0 = inlined_call_operand.vmem [shape: f32[256,16], index: 0, kind: input, shape index: {}]   ;;  %s1582_s1 = inlined_call_operand.vmem [shape: f32[16,256], index: 1, kind: input, shape index: {}]   ;;  %s1583_s2 = inlined_call_operand.vmem [shape: f32[1,256], index: 2, kind: input, shape index: {}]   ;;  %s1584_s3 = inlined_call_operand.vmem [shape: f32[256,128], index: 3, kind: input, shape index: {}]   ;;  %s1585_s4 = inlined_call_operand.vmem [shape: f32[1,128], index: 4, kind: input, shape index: {}]   ;;  %s1586_s5 = inlined_call_operand.hbm [shape: f32[256,128], index: 5, kind: output, shape index: {}]  }
   0x1   :  { %12 = vsyncpa [#allocation3 + $0x1], 0  ;;  %s1238_s18 = smov 0   ;;  %s1240_s19 = smov 0  }
   0x2   :  { %s1242_s20 = smov 0   ;;  %s1244_s21 = smov 0  }
   0x3 LB: > { %s1259_s22 = sadd.s32 4294967295, %s1202_s21   ;;  %s872_s23 = sadd.s32 4294967294, %s1202_s21   ;;  %s1202_s21 = sphi %s1244_s21, %s1592_s21   ;;  %s1198_s20 = sphi %s1242_s20, %s1591_s20   ;;  %s1194_s19 = sphi %s1240_s19, %s1590_s19   ;;  %s1190_s18 = sphi %s1238_s18, %s1589_s18  }
   0x4   : > { %s1263_s24 = sadd.s32 1, %s1202_s21   ;;  %s135_s25 = sadd.s32 1, %s1198_s20 }
   0x5   : > { %s132_s26 = ssub.s32 %s1202_s21, %s1263_s24  ;;  %p145_p0 = scmp.ne.s32.totalorder %s1198_s20, %s1194_s19 }
   0x6   : > { %p133_p1 = scmp.eq.s32.totalorder %s132_s26, 0  ;;  %p146_p2 = scmp.eq.s32.totalorder %s1259_s22, 1 }
   0x7   : > { %p151_p3 = scmp.ne.s32.totalorder %s1194_s19, %s1190_s18  ;;  %p152_p4 = scmp.eq.s32.totalorder %s872_s23, 1 }
   0x8   : > { %s1274_s27 = scalar_select %p133_p1, %s1198_s20, %s135_s25  }
   0x9   : > { %p1276_p5 = por %p146_p2, %p145_p0  ;;  %p1280_p6 = por %p152_p4, %p151_p3 }
   0xa   : > { %p875_p7 = scmp.ge.s32.totalorder %s1202_s21, 1  ;;  %p191_p8 = scmp.lt.s32.totalorder %s1202_s21, 3 }
   0xc   : > { %p192_p9 = pnand %p875_p7, %p191_p8 }
   0xd   : > { %v243_v0 = vld [vmem:[%s1582_s1 + $0x8] sm:$0xff] (!%p192_p9)  ;;  %v245_v1 = vld [vmem:[%s1582_s1 + $0x18] sm:$0xff] (!%p192_p9)  ;;  %v242_v2 = vld [vmem:[%s1582_s1] sm:$0xff] (!%p192_p9)  ;;  %s877_s11 = sshll.u32 (!%p192_p9), %s1259_s22, 4  ;;  %v1204_v5 = vmov (!%p192_p9), 0.0   ;;  %vm258_vm0 = vcmask (!%p192_p9), 130048  }
   0xe   : > { %195 = sbr.rel (%p192_p9) target bundleno = 550 (0x226), region = 40  ;;  %v982_v3 = vpack.c.bf16 (!%p192_p9), %v245_v1, %v243_v0  ;;  %v244_v4 = vld [vmem:[%s1582_s1 + $0x10] sm:$0xff] (!%p192_p9)  ;;  %371 = vmatprep.mubr.f32.mxu0 (!%p192_p9), %v1204_v5  ;;  %p220_p10 = scmp.lt.s32.totalorder (!%p192_p9), %s877_s11, 31  ;;  %v612_v6 = vld [vmem:[%s1584_s3 + $0x80] sm:$0xff] (!%p192_p9)  ;;  %v613_v7 = vld [vmem:[%s1584_s3 + $0x88] sm:$0xff] (!%p192_p9) }
   0xf   : > { %v984_v8 = vpack.c.bf16 (!%p192_p9), %v244_v4, %v242_v2  ;;  %v986_v9 = vpack.c.bf16 (!%p192_p9), %v613_v7, %v612_v6  ;;  %v596_v10 = vld [vmem:[%s1584_s3] sm:$0xff] (!%p192_p9)  ;;  %v597_v11 = vld [vmem:[%s1584_s3 + $0x8] sm:$0xff] (!%p192_p9)  ;;  %v614_v12 = vld [vmem:[%s1584_s3 + $0x90] sm:$0xff] (!%p192_p9)  ;;  %v248_v7 = vlaneseq (!%p192_p9)  ;;  %s901_s9 = sshll.u32 (!%p192_p9), %s1259_s22, 11  ;;  %s1205_s16 = smov (!%p192_p9), [#allocation2]  }
  0x10   : > { %983 = vmatprep.subr.bf16.mxu0 (!%p192_p9), %v982_v3  ;;  %v988_v13 = vpack.c.bf16 (!%p192_p9), %v597_v11, %v596_v10  ;;  %v615_v14 = vld [vmem:[%s1584_s3 + $0x98] sm:$0xff] (!%p192_p9)  ;;  %v598_v16 = vld [vmem:[%s1584_s3 + $0x10] sm:$0xff] (!%p192_p9)  ;;  %v616_v18 = vld [vmem:[%s1584_s3 + $0xa0] sm:$0xff] (!%p192_p9)  ;;  %s1532_s14 = scalar_lea.hbm (!%p192_p9), %s1586_s5, %s901_s9  ;;  %s1144_s17 = sshll.u32 (!%p192_p9), %s1205_s16, 4  ;;  %s1145_s17 = int_to_ptr.vmem [resolvable:$false] %s1144_s17 }
  0x11   : > { %985 = vmatpush1.bf16.msra.mxu0 (!%p192_p9), %v984_v8  ;;  %v990_v15 = vpack.c.bf16 (!%p192_p9), %v615_v14, %v614_v12  ;;  %1018 = vmatprep.subr.bf16.mxu1 (!%p192_p9), %v986_v9  ;;  %v599_v17 = vld [vmem:[%s1584_s3 + $0x18] sm:$0xff] (!%p192_p9)  ;;  %v617_v19 = vld [vmem:[%s1584_s3 + $0xa8] sm:$0xff] (!%p192_p9)  ;;  %v600_v24 = vld [vmem:[%s1584_s3 + $0x20] sm:$0xff] (!%p192_p9)  ;;  %v249_v8 = vshrl.u32 (!%p192_p9), %v248_v7, 7  ;;  %s1146_s25 = scalar_lea.vmem (!%p192_p9), %s1145_s17, 4096 }
  0x12   : > { %987 = vmatprep.subr.bf16.mxu0 (!%p192_p9), %v986_v9  ;;  %1026 = vmatpush3.bf16.msra.mxu1 (!%p192_p9), %v988_v13  ;;  %v992_v21 = vpack.c.bf16 (!%p192_p9), %v599_v17, %v598_v16  ;;  %v994_v23 = vpack.c.bf16 (!%p192_p9), %v617_v19, %v616_v18  ;;  %v601_v25 = vld [vmem:[%s1584_s3 + $0x28] sm:$0xff] (!%p192_p9)  ;;  %v618_v41 = vld [vmem:[%s1584_s3 + $0xb0] sm:$0xff] (!%p192_p9)  ;;  %v619_v42 = vld [vmem:[%s1584_s3 + $0xb8] sm:$0xff] (!%p192_p9) }
  0x13   : > { %1019 = vmatprep.subr.bf16.mxu1 (!%p192_p9), %v990_v15  ;;  %v996_v26 = vpack.c.bf16 (!%p192_p9), %v601_v25, %v600_v24  ;;  %v998_v43 = vpack.c.bf16 (!%p192_p9), %v619_v42, %v618_v41  ;;  %v602_v44 = vld [vmem:[%s1584_s3 + $0x30] sm:$0xff] (!%p192_p9)  ;;  %v603_v45 = vld [vmem:[%s1584_s3 + $0x38] sm:$0xff] (!%p192_p9)  ;;  %v620_v47 = vld [vmem:[%s1584_s3 + $0xc0] sm:$0xff] (!%p192_p9)  ;;  %v250_v9 = vsub.s32 (!%p192_p9), 0, %v249_v8  ;;  %v254_v11 = vsub.s32 (!%p192_p9), 1, %v249_v8 }
  0x14   : > { %v1000_v46 = vpack.c.bf16 (!%p192_p9), %v603_v45, %v602_v44  ;;  %v621_v48 = vld [vmem:[%s1584_s3 + $0xc8] sm:$0xff] (!%p192_p9)  ;;  %v604_v50 = vld [vmem:[%s1584_s3 + $0x40] sm:$0xff] (!%p192_p9)  ;;  %v622_v53 = vld [vmem:[%s1584_s3 + $0xd0] sm:$0xff] (!%p192_p9) }
  0x15   : > { %s1594_s11 = smov (!%p220_p10, %s877_s11), 31  ;;  %v1002_v49 = vpack.c.bf16 %v621_v48, %v620_v47  ;;  %v605_v51 = vld [vmem:[%s1584_s3 + $0x48] sm:$0xff]  ;;  %v623_v54 = vld [vmem:[%s1584_s3 + $0xd8] sm:$0xff]  ;;  %v606_v56 = vld [vmem:[%s1584_s3 + $0x50] sm:$0xff] }
  0x16   : > { %s878_s10 = sshll.u32 %s1594_s11, 3  ;;  %1027 = vmatpush3.bf16.msra.mxu1 %v992_v21  ;;  %v1004_v52 = vpack.c.bf16 %v605_v51, %v604_v50  ;;  %v1006_v55 = vpack.c.bf16 %v623_v54, %v622_v53  ;;  %v607_v57 = vld [vmem:[%s1584_s3 + $0x58] sm:$0xff]  ;;  %v624_v59 = vld [vmem:[%s1584_s3 + $0xe0] sm:$0xff]  ;;  %v625_v60 = vld [vmem:[%s1584_s3 + $0xe8] sm:$0xff]  ;;  %s216_s11 = sand.u32 1, %s1194_s19  }
  0x17   : > { %s1327_s23 = scalar_lea.vmem %s1581_s0, %s878_s10  ;;  %1020 = vmatprep.subr.bf16.mxu1 %v994_v23  ;;  %v1008_v58 = vpack.c.bf16 %v607_v57, %v606_v56  ;;  %v1010_v61 = vpack.c.bf16 %v625_v60, %v624_v59  ;;  %v608_v62 = vld [vmem:[%s1584_s3 + $0x60] sm:$0xff]  ;;  %v609_v63 = vld [vmem:[%s1584_s3 + $0x68] sm:$0xff]  ;;  %v626_v1 = vld [vmem:[%s1584_s3 + $0xf0] sm:$0xff]  ;;  %s876_s30 = sshll.u32 %s216_s11, 7 }
  0x18   : > { %v226_v20 = vld [vmem:[%s1327_s23] sm:$0xff]  ;;  %v227_v22 = vld [vmem:[%s1327_s23 + $0x8] sm:$0xff]  ;;  %v228_v27 = vld [vmem:[%s1327_s23 + $0x10] sm:$0xff]  ;;  %v1012_v0 = vpack.c.bf16 %v609_v63, %v608_v62  ;;  %s1496_s8 = scalar_lea.vmem [#allocation2], %s876_s30  ;;  %s1540_s15 = scalar_lea.sflag [#allocation3], %s216_s11 }
  0x19   : > { %879 = vmatmul.mubr.msk.f32.vlgmr.msra.gmra.mrb[0].mxu0 %vm258_vm0, %v226_v20  ;;  %v229_v28 = vld [vmem:[%s1327_s23 + $0x18] sm:$0xff]  ;;  %v230_v29 = vld [vmem:[%s1327_s23 + $0x20] sm:$0xff]  ;;  %v231_v30 = vld [vmem:[%s1327_s23 + $0x28] sm:$0xff]  ;;  %s810_s10 = sshll.u32 %s1496_s8, 4  ;;  %s1534_s10 = int_to_ptr.vmem [resolvable:$true] %s810_s10 }
  0x1a   : > { %377 = vmatprep.mubr.f32.mxu0 %v1204_v5  ;;  %989 = vmatpush3.bf16.msra.mxu0 %v988_v13  ;;  %v232_v31 = vld [vmem:[%s1327_s23 + $0x30] sm:$0xff]  ;;  %v233_v32 = vld [vmem:[%s1327_s23 + $0x38] sm:$0xff]  ;;  %v234_v33 = vld [vmem:[%s1327_s23 + $0x40] sm:$0xff]  ;;  %s1140_s22 = scalar_lea.vmem %s1534_s10, 2048  ;;  %p1147_p0 = scmp.lt.s32.totalorder %s1534_s10, %s1145_s17 }
  0x1b   : > { %991 = vmatprep.subr.bf16.mxu0 %v990_v15  ;;  %1028 = vmatpush3.bf16.msra.mxu1 %v996_v26  ;;  %v235_v34 = vld [vmem:[%s1327_s23 + $0x48] sm:$0xff]  ;;  %v236_v35 = vld [vmem:[%s1327_s23 + $0x50] sm:$0xff]  ;;  %v237_v36 = vld [vmem:[%s1327_s23 + $0x58] sm:$0xff]  ;;  %p1141_p11 = scmp.ne.s32.totalorder %s1534_s10, %s1140_s22  ;;  %p1148_p1 = scmp.lt.s32.totalorder %s1146_s25, %s1140_s22 }
  0x1c   : > { %v238_v37 = vld [vmem:[%s1327_s23 + $0x60] sm:$0xff]  ;;  %v239_v38 = vld [vmem:[%s1327_s23 + $0x68] sm:$0xff]  ;;  %v240_v39 = vld [vmem:[%s1327_s23 + $0x70] sm:$0xff]  ;;  %1021 = vmatprep.subr.bf16.mxu1 %v998_v43 }
  0x1d   : > { %880 = vmatmul.mubr.msk.f32.gmra.mrb[2].mxu0 %vm258_vm0, %v227_v22  ;;  %v241_v40 = vld [vmem:[%s1327_s23 + $0x78] sm:$0xff]  ;;  %v610_v4 = vld [vmem:[%s1584_s3 + $0x70] sm:$0xff]  ;;  %v246_v10 = vld [vmem:[%s1583_s2] sm:$0x3]  ;;  %p1142_p12 = pnand %p1141_p11, %p1276_p5  ;;  %p1149_p2 = por %p1148_p1, %p1147_p0 }
  0x1e   : > { %383 = vmatprep.mubr.f32.mxu0 %v1204_v5  ;;  %993 = vmatpush3.bf16.msra.mxu0 %v992_v21  ;;  %v627_v2 = vld [vmem:[%s1584_s3 + $0xf8] sm:$0xff]  ;;  %v1451_v12 = vrot.slane %v246_v10, %v250_v9  ;;  %v1453_v13 = vrot.slane %v246_v10, %v254_v11 }
  0x1f   : > { %995 = vmatprep.subr.bf16.mxu0 %v994_v23  ;;  %1029 = vmatpush3.bf16.msra.mxu1 %v1000_v46  ;;  %v1014_v3 = vpack.c.bf16 %v627_v2, %v626_v1  ;;  %p1143_p13 = pneg %p1142_p12 }
  0x20   : > { %1022 = vmatprep.subr.bf16.mxu1 %v1002_v49 }
  0x21   : > { %881 = vmatmul.mubr.msk.f32.gmra.mrb[4].mxu0 %vm258_vm0, %v228_v27  ;;  %p1150_p3 = pnand %p1149_p2, %p1143_p13 }
  0x22   : > { %389 = vmatprep.mubr.f32.mxu0 %v1204_v5  ;;  %997 = vmatpush3.bf16.msra.mxu0 %v996_v26 }
  0x23   : > { %999 = vmatprep.subr.bf16.mxu0 %v998_v43  ;;  %1030 = vmatpush3.bf16.msra.mxu1 %v1004_v52 }
  0x24   : > { %1023 = vmatprep.subr.bf16.mxu1 %v1006_v55 }
  0x25   : > { %882 = vmatmul.mubr.msk.f32.gmra.mrb[6].mxu0 %vm258_vm0, %v229_v28 }
  0x26   : > { %395 = vmatprep.mubr.f32.mxu0 %v1204_v5  ;;  %1001 = vmatpush3.bf16.msra.mxu0 %v1000_v46 }
  0x27   : > { %1003 = vmatprep.subr.bf16.mxu0 %v1002_v49  ;;  %1031 = vmatpush3.bf16.msra.mxu1 %v1008_v58 }
  0x28   : > { %1024 = vmatprep.subr.bf16.mxu1 %v1010_v61 }
  0x29   : > { %883 = vmatmul.mubr.msk.f32.gmra.mrb[8].mxu0 %vm258_vm0, %v230_v29 }
  0x2a   : > { %401 = vmatprep.mubr.f32.mxu0 %v1204_v5  ;;  %1005 = vmatpush3.bf16.msra.mxu0 %v1004_v52 }
  0x2b   : > { %1007 = vmatprep.subr.bf16.mxu0 %v1006_v55  ;;  %1032 = vmatpush3.bf16.msra.mxu1 %v1012_v0 }
  0x2c   : > { %1025 = vmatprep.subr.bf16.mxu1 %v1014_v3 }
  0x2d   : > { %884 = vmatmul.mubr.msk.f32.gmra.mrb[10].mxu0 %vm258_vm0, %v231_v30 }
  0x2e   : > { %407 = vmatprep.mubr.f32.mxu0 %v1204_v5  ;;  %1009 = vmatpush3.bf16.msra.mxu0 %v1008_v58 }
  0x2f   : > { %1011 = vmatprep.subr.bf16.mxu0 %v1010_v61 }
  0x31   : > { %885 = vmatmul.mubr.msk.f32.gmra.mrb[12].mxu0 %vm258_vm0, %v232_v31 }
  0x32   : > { %413 = vmatprep.mubr.f32.mxu0 %v1204_v5  ;;  %1013 = vmatpush3.bf16.msra.mxu0 %v1012_v0 }
  0x33   : > { %1015 = vmatprep.subr.bf16.mxu0 %v1014_v3 }
  0x35   : > { %886 = vmatmul.mubr.msk.f32.gmra.mrb[14].mxu0 %vm258_vm0, %v233_v32 }
  0x36   : > { %419 = vmatprep.mubr.f32.mxu0 %v1204_v5 }
  0x39   : > { %887 = vmatmul.mubr.msk.f32.gmra.mrb[16].mxu0 %vm258_vm0, %v234_v33 }
  0x3a   : > { %425 = vmatprep.mubr.f32.mxu0 %v1204_v5 }
  0x3d   : > { %888 = vmatmul.mubr.msk.f32.gmra.mrb[18].mxu0 %vm258_vm0, %v235_v34 }
  0x3e   : > { %431 = vmatprep.mubr.f32.mxu0 %v1204_v5 }
  0x41   : > { %889 = vmatmul.mubr.msk.f32.gmra.mrb[20].mxu0 %vm258_vm0, %v236_v35 }
  0x42   : > { %437 = vmatprep.mubr.f32.mxu0 %v1204_v5 }
  0x45   : > { %890 = vmatmul.mubr.msk.f32.gmra.mrb[22].mxu0 %vm258_vm0, %v237_v36 }
  0x46   : > { %443 = vmatprep.mubr.f32.mxu0 %v1204_v5 }
  0x49   : > { %891 = vmatmul.mubr.msk.f32.gmra.mrb[24].mxu0 %vm258_vm0, %v238_v37 }
  0x4a   : > { %449 = vmatprep.mubr.f32.mxu0 %v1204_v5 }
  0x4d   : > { %892 = vmatmul.mubr.msk.f32.gmra.mrb[26].mxu0 %vm258_vm0, %v239_v38 }
  0x4e   : > { %455 = vmatprep.mubr.f32.mxu0 %v1204_v5 }
  0x51   : > { %893 = vmatmul.mubr.msk.f32.gmra.mrb[28].mxu0 %vm258_vm0, %v240_v39 }
  0x52   : > { %461 = vmatprep.mubr.f32.mxu0 %v1204_v5  ;;  %v611_v5 = vld [vmem:[%s1584_s3 + $0x78] sm:$0xff] }
  0x53   : > { %v1016_v6 = vpack.c.bf16 %v611_v5, %v610_v4 }
  0x55   : > { %894 = vmatmul.mubr.msk.f32.gmra.mrb[30].mxu0 %vm258_vm0, %v241_v40  ;;  %1033 = vmatpush3.bf16.msra.mxu1 %v1016_v6 }
  0x56   : > { %1017 = vmatpush3.bf16.msra.mxu0 %v1016_v6 }
  0xec   : > { %v373_v14 = vpop.f32.mrb[0].mxu0 }
  0xed   : > { %v374_v15 = vadd.f32 %v373_v14, %v1451_v12  ;;  %v375_v16 = vpop.f32.mrb[1].mxu0 }
  0xee   : > { %v376_v17 = vadd.f32 %v375_v16, %v1453_v13 }
  0xef   : > { %v468_v18 = vmul.f32 0.5, %v374_v15 }
  0xf0   : > { %v469_v19 = vmul.f32 0.5, %v376_v17  ;;  %v379_v20 = vpop.f32.mrb[2].mxu0 }
  0xf1   : > { %1076 = vtanh.f32 %v468_v18  ;;  %v380_v21 = vadd.f32 %v379_v20, %v1451_v12  ;;  %v381_v22 = vpop.f32.mrb[3].mxu0 }
  0xf2   : > { %1078 = vtanh.f32 %v469_v19  ;;  %v382_v23 = vadd.f32 %v381_v22, %v1453_v13 }
  0xf3   : > { %v470_v24 = vmul.f32 0.5, %v380_v21 }
  0xf4   : > { %v471_v25 = vmul.f32 0.5, %v382_v23  ;;  %v385_v26 = vpop.f32.mrb[4].mxu0 }
  0xf5   : > { %1080 = vtanh.f32 %v470_v24  ;;  %v386_v27 = vadd.f32 %v385_v26, %v1451_v12  ;;  %v387_v28 = vpop.f32.mrb[5].mxu0 }
  0xf6   : > { %1082 = vtanh.f32 %v471_v25  ;;  %v388_v29 = vadd.f32 %v387_v28, %v1453_v13 }
  0xf7   : > { %v472_v30 = vmul.f32 0.5, %v386_v27 }
  0xf8   : > { %v473_v31 = vmul.f32 0.5, %v388_v29  ;;  %v391_v32 = vpop.f32.mrb[6].mxu0 }
  0xf9   : > { %1084 = vtanh.f32 %v472_v30  ;;  %v392_v33 = vadd.f32 %v391_v32, %v1451_v12  ;;  %v393_v34 = vpop.f32.mrb[7].mxu0 }
  0xfa   : > { %1086 = vtanh.f32 %v473_v31  ;;  %v394_v35 = vadd.f32 %v393_v34, %v1453_v13 }
  0xfb   : > { %v1077_v36 = vpop.eup %1076  ;;  %v474_v37 = vmul.f32 0.5, %v392_v33 }
  0xfc   : > { %v1079_v38 = vpop.eup %1078  ;;  %v532_v39 = vadd.f32 1.0, %v1077_v36  ;;  %v475_v40 = vmul.f32 0.5, %v394_v35  ;;  %v397_v41 = vpop.f32.mrb[8].mxu0 }
  0xfd   : > { %v533_v42 = vadd.f32 1.0, %v1079_v38  ;;  %1088 = vtanh.f32 %v474_v37  ;;  %v398_v43 = vadd.f32 %v397_v41, %v1451_v12  ;;  %v399_v44 = vpop.f32.mrb[9].mxu0 }
  0xfe   : > { %1090 = vtanh.f32 %v475_v40  ;;  %v400_v45 = vadd.f32 %v399_v44, %v1453_v13  ;;  %v564_v50 = vmul.f32 0.5, %v532_v39 }
  0xff   : > { %v1081_v46 = vpop.eup %1080  ;;  %v476_v47 = vmul.f32 0.5, %v398_v43  ;;  %v565_v48 = vmul.f32 0.5, %v533_v42 }
 0x100   : > { %v1083_v49 = vpop.eup %1082  ;;  %v534_v51 = vadd.f32 1.0, %v1081_v46  ;;  %v477_v52 = vmul.f32 0.5, %v400_v45  ;;  %v403_v53 = vpop.f32.mrb[10].mxu0 }
 0x101   : > { %v535_v54 = vadd.f32 1.0, %v1083_v49  ;;  %1092 = vtanh.f32 %v476_v47  ;;  %v404_v55 = vadd.f32 %v403_v53, %v1451_v12  ;;  %v405_v56 = vpop.f32.mrb[11].mxu0  ;;  %699 = vmatprep.mubr.f32.mxu0 %v565_v48 }
 0x102   : > { %1094 = vtanh.f32 %v477_v52  ;;  %v406_v57 = vadd.f32 %v405_v56, %v1453_v13  ;;  %700 = vmatmul.mubr.f32.vlgmr.msra.gmra.mrb[32].mxu0 %v564_v50  ;;  %v566_v1 = vmul.f32 0.5, %v534_v51 }
 0x103   : > { %v1085_v58 = vpop.eup %1084  ;;  %v478_v59 = vmul.f32 0.5, %v404_v55  ;;  %v567_v60 = vmul.f32 0.5, %v535_v54 }
 0x104   : > { %v1087_v61 = vpop.eup %1086  ;;  %v536_v62 = vadd.f32 1.0, %v1085_v58  ;;  %v479_v63 = vmul.f32 0.5, %v406_v57  ;;  %v409_v0 = vpop.f32.mrb[12].mxu0 }
 0x105   : > { %v537_v2 = vadd.f32 1.0, %v1087_v61  ;;  %1096 = vtanh.f32 %v478_v59  ;;  %v410_v3 = vadd.f32 %v409_v0, %v1451_v12  ;;  %v411_v4 = vpop.f32.mrb[13].mxu0  ;;  %704 = vmatprep.mubr.f32.mxu0 %v567_v60 }
 0x106   : > { %1098 = vtanh.f32 %v479_v63  ;;  %v412_v5 = vadd.f32 %v411_v4, %v1453_v13  ;;  %705 = vmatmul.mubr.f32.gmra.mrb[34].mxu0 %v566_v1  ;;  %v568_v15 = vmul.f32 0.5, %v536_v62 }
 0x107   : > { %v1089_v6 = vpop.eup %1088  ;;  %v480_v7 = vmul.f32 0.5, %v410_v3  ;;  %v569_v8 = vmul.f32 0.5, %v537_v2 }
 0x108   : > { %v1091_v9 = vpop.eup %1090  ;;  %v538_v10 = vadd.f32 1.0, %v1089_v6  ;;  %v481_v11 = vmul.f32 0.5, %v412_v5  ;;  %v415_v14 = vpop.f32.mrb[14].mxu0 }
 0x109   : > { %1100 = vtanh.f32 %v480_v7  ;;  %v416_v16 = vadd.f32 %v415_v14, %v1451_v12  ;;  %v417_v17 = vpop.f32.mrb[15].mxu0  ;;  %709 = vmatprep.mubr.f32.mxu0 %v569_v8  ;;  %v539_v18 = vadd.f32 1.0, %v1091_v9 }
 0x10a   : > { %1102 = vtanh.f32 %v481_v11  ;;  %v418_v19 = vadd.f32 %v417_v17, %v1453_v13  ;;  %710 = vmatmul.mubr.f32.gmra.mrb[36].mxu0 %v568_v15  ;;  %v570_v27 = vmul.f32 0.5, %v538_v10 }
 0x10b   : > { %v1093_v20 = vpop.eup %1092  ;;  %v482_v21 = vmul.f32 0.5, %v416_v16  ;;  %v571_v22 = vmul.f32 0.5, %v539_v18 }
 0x10c   : > { %v1095_v23 = vpop.eup %1094  ;;  %v540_v24 = vadd.f32 1.0, %v1093_v20  ;;  %v483_v25 = vmul.f32 0.5, %v418_v19  ;;  %v421_v26 = vpop.f32.mrb[16].mxu0 }
 0x10d   : > { %v541_v28 = vadd.f32 1.0, %v1095_v23  ;;  %1104 = vtanh.f32 %v482_v21  ;;  %v422_v29 = vadd.f32 %v421_v26, %v1451_v12  ;;  %v423_v30 = vpop.f32.mrb[17].mxu0  ;;  %714 = vmatprep.mubr.f32.mxu1 %v571_v22 }
 0x10e   : > { %1106 = vtanh.f32 %v483_v25  ;;  %v424_v31 = vadd.f32 %v423_v30, %v1453_v13  ;;  %715 = vmatmul.mubr.f32.vlgmr.msra.gmra.mrb[0].mxu1 %v570_v27  ;;  %v572_v39 = vmul.f32 0.5, %v540_v24 }
 0x10f   : > { %v1097_v32 = vpop.eup %1096  ;;  %v484_v33 = vmul.f32 0.5, %v422_v29  ;;  %v573_v34 = vmul.f32 0.5, %v541_v28 }
 0x110   : > { %v1099_v35 = vpop.eup %1098  ;;  %v542_v36 = vadd.f32 1.0, %v1097_v32  ;;  %v485_v37 = vmul.f32 0.5, %v424_v31  ;;  %v427_v38 = vpop.f32.mrb[18].mxu0 }
 0x111   : > { %v543_v40 = vadd.f32 1.0, %v1099_v35  ;;  %1108 = vtanh.f32 %v484_v33  ;;  %v428_v41 = vadd.f32 %v427_v38, %v1451_v12  ;;  %v429_v42 = vpop.f32.mrb[19].mxu0  ;;  %719 = vmatprep.mubr.f32.mxu1 %v573_v34 }
 0x112   : > { %1110 = vtanh.f32 %v485_v37  ;;  %v430_v43 = vadd.f32 %v429_v42, %v1453_v13  ;;  %720 = vmatmul.mubr.f32.gmra.mrb[2].mxu1 %v572_v39  ;;  %v574_v51 = vmul.f32 0.5, %v542_v36 }
 0x113   : > { %v1101_v44 = vpop.eup %1100  ;;  %v486_v45 = vmul.f32 0.5, %v428_v41  ;;  %v575_v46 = vmul.f32 0.5, %v543_v40 }
 0x114   : > { %v1103_v47 = vpop.eup %1102  ;;  %v544_v48 = vadd.f32 1.0, %v1101_v44  ;;  %v487_v49 = vmul.f32 0.5, %v430_v43  ;;  %v433_v50 = vpop.f32.mrb[20].mxu0 }
 0x115   : > { %v545_v52 = vadd.f32 1.0, %v1103_v47  ;;  %1112 = vtanh.f32 %v486_v45  ;;  %v434_v53 = vadd.f32 %v433_v50, %v1451_v12  ;;  %v435_v54 = vpop.f32.mrb[21].mxu0  ;;  %724 = vmatprep.mubr.f32.mxu1 %v575_v46 }
 0x116   : > { %1114 = vtanh.f32 %v487_v49  ;;  %v436_v55 = vadd.f32 %v435_v54, %v1453_v13  ;;  %725 = vmatmul.mubr.f32.gmra.mrb[4].mxu1 %v574_v51  ;;  %v576_v63 = vmul.f32 0.5, %v544_v48 }
 0x117   : > { %v1105_v56 = vpop.eup %1104  ;;  %v488_v57 = vmul.f32 0.5, %v434_v53  ;;  %v577_v58 = vmul.f32 0.5, %v545_v52 }
 0x118   : > { %v1107_v59 = vpop.eup %1106  ;;  %v546_v60 = vadd.f32 1.0, %v1105_v56  ;;  %v489_v61 = vmul.f32 0.5, %v436_v55  ;;  %v439_v62 = vpop.f32.mrb[22].mxu0 }
 0x119   : > { %v547_v0 = vadd.f32 1.0, %v1107_v59  ;;  %1116 = vtanh.f32 %v488_v57  ;;  %v440_v1 = vadd.f32 %v439_v62, %v1451_v12  ;;  %v441_v2 = vpop.f32.mrb[23].mxu0  ;;  %729 = vmatprep.mubr.f32.mxu1 %v577_v58 }
 0x11a   : > { %1118 = vtanh.f32 %v489_v61  ;;  %v442_v3 = vadd.f32 %v441_v2, %v1453_v13  ;;  %730 = vmatmul.mubr.f32.gmra.mrb[6].mxu1 %v576_v63  ;;  %v578_v11 = vmul.f32 0.5, %v546_v60 }
 0x11b   : > { %v1109_v4 = vpop.eup %1108  ;;  %v490_v5 = vmul.f32 0.5, %v440_v1  ;;  %v579_v6 = vmul.f32 0.5, %v547_v0 }
 0x11c   : > { %v1111_v7 = vpop.eup %1110  ;;  %v548_v8 = vadd.f32 1.0, %v1109_v4  ;;  %v491_v9 = vmul.f32 0.5, %v442_v3  ;;  %v445_v10 = vpop.f32.mrb[24].mxu0 }
 0x11d   : > { %v549_v14 = vadd.f32 1.0, %v1111_v7  ;;  %1120 = vtanh.f32 %v490_v5  ;;  %v446_v15 = vadd.f32 %v445_v10, %v1451_v12  ;;  %v447_v16 = vpop.f32.mrb[25].mxu0  ;;  %734 = vmatprep.mubr.f32.mxu1 %v579_v6 }
 0x11e   : > { %1122 = vtanh.f32 %v491_v9  ;;  %v448_v17 = vadd.f32 %v447_v16, %v1453_v13  ;;  %735 = vmatmul.mubr.f32.gmra.mrb[8].mxu1 %v578_v11  ;;  %v580_v25 = vmul.f32 0.5, %v548_v8 }
 0x11f   : > { %v1113_v18 = vpop.eup %1112  ;;  %v492_v19 = vmul.f32 0.5, %v446_v15  ;;  %v581_v20 = vmul.f32 0.5, %v549_v14 }
 0x120   : > { %v1115_v21 = vpop.eup %1114  ;;  %v550_v22 = vadd.f32 1.0, %v1113_v18  ;;  %v493_v23 = vmul.f32 0.5, %v448_v17  ;;  %v451_v24 = vpop.f32.mrb[26].mxu0 }
 0x121   : > { %v551_v26 = vadd.f32 1.0, %v1115_v21  ;;  %1124 = vtanh.f32 %v492_v19  ;;  %v452_v27 = vadd.f32 %v451_v24, %v1451_v12  ;;  %v453_v28 = vpop.f32.mrb[27].mxu0  ;;  %739 = vmatprep.mubr.f32.mxu1 %v581_v20  ;;  %v1493_v19 = vld [vmem:[%s1585_s4] ss:$0 sm:$0xff] }
 0x122   : > { %1126 = vtanh.f32 %v493_v23  ;;  %v454_v29 = vadd.f32 %v453_v28, %v1453_v13  ;;  %740 = vmatmul.mubr.f32.gmra.mrb[10].mxu1 %v580_v25  ;;  %v582_v37 = vmul.f32 0.5, %v550_v22 }
 0x123   : > { %v1117_v30 = vpop.eup %1116  ;;  %v494_v31 = vmul.f32 0.5, %v452_v27  ;;  %v583_v32 = vmul.f32 0.5, %v551_v26 }
 0x124   : > { %v1119_v33 = vpop.eup %1118  ;;  %v552_v34 = vadd.f32 1.0, %v1117_v30  ;;  %v495_v35 = vmul.f32 0.5, %v454_v29  ;;  %v457_v36 = vpop.f32.mrb[28].mxu0 }
 0x125   : > { %v553_v38 = vadd.f32 1.0, %v1119_v33  ;;  %1128 = vtanh.f32 %v494_v31  ;;  %v458_v39 = vadd.f32 %v457_v36, %v1451_v12  ;;  %v459_v40 = vpop.f32.mrb[29].mxu0  ;;  %744 = vmatprep.mubr.f32.mxu1 %v583_v32 }
 0x126   : > { %1130 = vtanh.f32 %v495_v35  ;;  %v460_v41 = vadd.f32 %v459_v40, %v1453_v13  ;;  %745 = vmatmul.mubr.f32.gmra.mrb[12].mxu1 %v582_v37  ;;  %v584_v49 = vmul.f32 0.5, %v552_v34 }
 0x127   : > { %v1121_v42 = vpop.eup %1120  ;;  %v496_v43 = vmul.f32 0.5, %v458_v39  ;;  %v585_v44 = vmul.f32 0.5, %v553_v38 }
 0x128   : > { %v1123_v45 = vpop.eup %1122  ;;  %v554_v46 = vadd.f32 1.0, %v1121_v42  ;;  %v497_v47 = vmul.f32 0.5, %v460_v41  ;;  %v463_v48 = vpop.f32.mrb[30].mxu0 }
 0x129   : > { %v555_v50 = vadd.f32 1.0, %v1123_v45  ;;  %1132 = vtanh.f32 %v496_v43  ;;  %v464_v51 = vadd.f32 %v463_v48, %v1451_v12  ;;  %v465_v52 = vpop.f32.mrb[31].mxu0  ;;  %749 = vmatprep.mubr.f32.mxu1 %v585_v44 }
 0x12a   : > { %1134 = vtanh.f32 %v497_v47  ;;  %v466_v53 = vadd.f32 %v465_v52, %v1453_v13  ;;  %750 = vmatmul.mubr.f32.gmra.mrb[14].mxu1 %v584_v49  ;;  %v586_v60 = vmul.f32 0.5, %v554_v46 }
 0x12b   : > { %v1125_v54 = vpop.eup %1124  ;;  %v498_v55 = vmul.f32 0.5, %v464_v51  ;;  %v587_v56 = vmul.f32 0.5, %v555_v50 }
 0x12c   : > { %v1127_v57 = vpop.eup %1126  ;;  %v556_v58 = vadd.f32 1.0, %v1125_v54  ;;  %v499_v59 = vmul.f32 0.5, %v466_v53 }
 0x12d   : > { %v557_v61 = vadd.f32 1.0, %v1127_v57  ;;  %1136 = vtanh.f32 %v498_v55  ;;  %754 = vmatprep.mubr.f32.mxu1 %v587_v56 }
 0x12e   : > { %1138 = vtanh.f32 %v499_v59  ;;  %755 = vmatmul.mubr.f32.gmra.mrb[16].mxu1 %v586_v60  ;;  %v588_v1 = vmul.f32 0.5, %v556_v58 }
 0x12f   : > { %v1129_v62 = vpop.eup %1128  ;;  %v589_v12 = vmul.f32 0.5, %v557_v61 }
 0x130   : > { %v1131_v63 = vpop.eup %1130  ;;  %v558_v0 = vadd.f32 1.0, %v1129_v62 }
 0x131   : > { %v559_v2 = vadd.f32 1.0, %v1131_v63  ;;  %759 = vmatprep.mubr.f32.mxu1 %v589_v12 }
 0x132   : > { %760 = vmatmul.mubr.f32.gmra.mrb[18].mxu1 %v588_v1  ;;  %v590_v6 = vmul.f32 0.5, %v558_v0 }
 0x133   : > { %v1133_v13 = vpop.eup %1132  ;;  %v591_v3 = vmul.f32 0.5, %v559_v2 }
 0x134   : > { %v1135_v4 = vpop.eup %1134  ;;  %v560_v5 = vadd.f32 1.0, %v1133_v13 }
 0x135   : > { %v561_v7 = vadd.f32 1.0, %v1135_v4  ;;  %764 = vmatprep.mubr.f32.mxu1 %v591_v3 }
 0x136   : > { %765 = vmatmul.mubr.f32.gmra.mrb[20].mxu1 %v590_v6  ;;  %v592_v14 = vmul.f32 0.5, %v560_v5 }
 0x137   : > { %v1137_v8 = vpop.eup %1136  ;;  %v593_v9 = vmul.f32 0.5, %v561_v7 }
 0x138   : > { %v1139_v10 = vpop.eup %1138  ;;  %v562_v11 = vadd.f32 1.0, %v1137_v8 }
 0x139   : > { %v563_v15 = vadd.f32 1.0, %v1139_v10  ;;  %769 = vmatprep.mubr.f32.mxu1 %v593_v9 }
 0x13a   : > { %770 = vmatmul.mubr.f32.gmra.mrb[22].mxu1 %v592_v14  ;;  %v594_v17 = vmul.f32 0.5, %v562_v11 }
 0x13b   : > { %v595_v16 = vmul.f32 0.5, %v563_v15 }
 0x13d   : > { %774 = vmatprep.mubr.f32.mxu1 %v595_v16 }
 0x13e   : > { %775 = vmatmul.mubr.f32.gmra.mrb[24].mxu1 %v594_v17 }
 0x1d5   : > { %v934_v18 = vpop.f32.mrb[32].mxu0 }
 0x1d6   : > { %v935_v20 = vpop.f32.mrb[33].mxu0 }
 0x1d7   : > { %v936_v21 = vadd.f32 %v935_v20, %v934_v18 }
 0x1d9   : > { %v702_v22 = vadd.f32 %v936_v21, %v1493_v19  ;;  %v937_v23 = vpop.f32.mrb[34].mxu0 }
 0x1da   : > { %v938_v24 = vpop.f32.mrb[35].mxu0 }
 0x1db   : > { %780 = vst [vmem:[%s1496_s8] sm:$0xff] %v702_v22  ;;  %v939_v25 = vadd.f32 %v938_v24, %v937_v23 }
 0x1dd   : > { %v707_v26 = vadd.f32 %v939_v25, %v1493_v19  ;;  %v940_v27 = vpop.f32.mrb[36].mxu0 }
 0x1de   : > { %v941_v28 = vpop.f32.mrb[37].mxu0 }
 0x1df   : > { %781 = vst [vmem:[%s1496_s8 + $0x8] sm:$0xff] %v707_v26  ;;  %v942_v29 = vadd.f32 %v941_v28, %v940_v27 }
 0x1e1   : > { %v712_v30 = vadd.f32 %v942_v29, %v1493_v19  ;;  %v943_v31 = vpop.f32.mrb[0].mxu1 }
 0x1e2   : > { %v944_v32 = vpop.f32.mrb[1].mxu1 }
 0x1e3   : > { %782 = vst [vmem:[%s1496_s8 + $0x10] sm:$0xff] %v712_v30  ;;  %v945_v33 = vadd.f32 %v944_v32, %v943_v31 }
 0x1e5   : > { %v717_v34 = vadd.f32 %v945_v33, %v1493_v19  ;;  %v946_v35 = vpop.f32.mrb[2].mxu1 }
 0x1e6   : > { %v947_v36 = vpop.f32.mrb[3].mxu1 }
 0x1e7   : > { %783 = vst [vmem:[%s1496_s8 + $0x18] sm:$0xff] %v717_v34  ;;  %v948_v37 = vadd.f32 %v947_v36, %v946_v35 }
 0x1e9   : > { %v722_v38 = vadd.f32 %v948_v37, %v1493_v19  ;;  %v949_v39 = vpop.f32.mrb[4].mxu1 }
 0x1ea   : > { %v950_v40 = vpop.f32.mrb[5].mxu1 }
 0x1eb   : > { %784 = vst [vmem:[%s1496_s8 + $0x20] sm:$0xff] %v722_v38  ;;  %v951_v41 = vadd.f32 %v950_v40, %v949_v39 }
 0x1ed   : > { %v727_v42 = vadd.f32 %v951_v41, %v1493_v19  ;;  %v952_v43 = vpop.f32.mrb[6].mxu1 }
 0x1ee   : > { %v953_v44 = vpop.f32.mrb[7].mxu1 }
 0x1ef   : > { %785 = vst [vmem:[%s1496_s8 + $0x28] sm:$0xff] %v727_v42  ;;  %v954_v45 = vadd.f32 %v953_v44, %v952_v43 }
 0x1f1   : > { %v732_v46 = vadd.f32 %v954_v45, %v1493_v19  ;;  %v955_v47 = vpop.f32.mrb[8].mxu1 }
 0x1f2   : > { %v956_v48 = vpop.f32.mrb[9].mxu1 }
 0x1f3   : > { %786 = vst [vmem:[%s1496_s8 + $0x30] sm:$0xff] %v732_v46  ;;  %v957_v49 = vadd.f32 %v956_v48, %v955_v47 }
 0x1f5   : > { %v737_v50 = vadd.f32 %v957_v49, %v1493_v19  ;;  %v958_v51 = vpop.f32.mrb[10].mxu1 }
 0x1f6   : > { %v959_v52 = vpop.f32.mrb[11].mxu1 }
 0x1f7   : > { %787 = vst [vmem:[%s1496_s8 + $0x38] sm:$0xff] %v737_v50  ;;  %v960_v53 = vadd.f32 %v959_v52, %v958_v51 }
 0x1f9   : > { %v742_v54 = vadd.f32 %v960_v53, %v1493_v19  ;;  %v961_v55 = vpop.f32.mrb[12].mxu1 }
 0x1fa   : > { %v962_v56 = vpop.f32.mrb[13].mxu1 }
 0x1fb   : > { %788 = vst [vmem:[%s1496_s8 + $0x40] sm:$0xff] %v742_v54  ;;  %v963_v57 = vadd.f32 %v962_v56, %v961_v55 }
 0x1fd   : > { %v747_v58 = vadd.f32 %v963_v57, %v1493_v19  ;;  %v964_v59 = vpop.f32.mrb[14].mxu1 }
 0x1fe   : > { %v965_v60 = vpop.f32.mrb[15].mxu1 }
 0x1ff   : > { %789 = vst [vmem:[%s1496_s8 + $0x48] sm:$0xff] %v747_v58  ;;  %v966_v61 = vadd.f32 %v965_v60, %v964_v59 }
 0x201   : > { %v752_v62 = vadd.f32 %v966_v61, %v1493_v19  ;;  %v967_v12 = vpop.f32.mrb[16].mxu1 }
 0x202   : > { %v968_v63 = vpop.f32.mrb[17].mxu1 }
 0x203   : > { %790 = vst [vmem:[%s1496_s8 + $0x50] sm:$0xff] %v752_v62  ;;  %v969_v0 = vadd.f32 %v968_v63, %v967_v12 }
 0x205   : > { %v757_v1 = vadd.f32 %v969_v0, %v1493_v19  ;;  %v970_v2 = vpop.f32.mrb[18].mxu1 }
 0x206   : > { %v971_v13 = vpop.f32.mrb[19].mxu1 }
 0x207   : > { %791 = vst [vmem:[%s1496_s8 + $0x58] sm:$0xff] %v757_v1  ;;  %v972_v3 = vadd.f32 %v971_v13, %v970_v2 }
 0x209   : > { %v762_v4 = vadd.f32 %v972_v3, %v1493_v19  ;;  %v973_v5 = vpop.f32.mrb[20].mxu1 }
 0x20a   : > { %v974_v6 = vpop.f32.mrb[21].mxu1 }
 0x20b   : > { %792 = vst [vmem:[%s1496_s8 + $0x60] sm:$0xff] %v762_v4  ;;  %v975_v7 = vadd.f32 %v974_v6, %v973_v5 }
 0x20d   : > { %v767_v8 = vadd.f32 %v975_v7, %v1493_v19  ;;  %v976_v9 = vpop.f32.mrb[22].mxu1 }
 0x20e   : > { %v977_v10 = vpop.f32.mrb[23].mxu1 }
 0x20f   : > { %793 = vst [vmem:[%s1496_s8 + $0x68] sm:$0xff] %v767_v8  ;;  %v978_v11 = vadd.f32 %v977_v10, %v976_v9 }
 0x211   : > { %v772_v14 = vadd.f32 %v978_v11, %v1493_v19  ;;  %v979_v15 = vpop.f32.mrb[24].mxu1 }
 0x212   : > { %v980_v16 = vpop.f32.mrb[25].mxu1 }
 0x213   : > { %794 = vst [vmem:[%s1496_s8 + $0x70] sm:$0xff] %v772_v14  ;;  %v981_v17 = vadd.f32 %v980_v16, %v979_v15 }
 0x215   : > { %v777_v18 = vadd.f32 %v981_v17, %v1493_v19 }
 0x217   : > { %795 = vst [vmem:[%s1496_s8 + $0x78] sm:$0xff] %v777_v18 }
 0x218   : > { %1153 = shalt.err (!%p1150_p3)
}
 0x219   : > { %s1154_s23 = scalar_lea.hbm %s1532_s14, 2048  ;;  %s1158_s30 = scalar_lea.hbm %s1586_s5, 4096 }
 0x21a   : > { %p1155_p4 = scmp.ne.s32.totalorder %s1532_s14, %s1154_s23  ;;  %p1159_p9 = scmp.lt.u32.totalorder %s1532_s14, %s1586_s5 }
 0x21b   : > { %p1160_p10 = scmp.lt.u32.totalorder %s1158_s30, %s1154_s23  ;;  %p1162_p12 = scmp.lt.u32.totalorder %s1154_s23, %s1532_s14 }
 0x21c   : > { %p1156_p7 = pnand %p1155_p4, %p1276_p5 }
 0x21d   : > { %p1161_p11 = por %p1160_p10, %p1159_p9 }
 0x21e   : > { %p1157_p8 = pneg %p1156_p7 }
 0x21f   : > { %p1163_p13 = por %p1162_p12, %p1161_p11 }
 0x221   : > { %p1164_p0 = pnand %p1163_p13, %p1157_p8 }
 0x223   : > { %1167 = shalt.err (!%p1164_p0)
}
 0x224   : > { %s1206_s8 = smov 128   ;;  %s1207_s9 = smov 8  }
 0x225   : > { %1034 = dma.vmem_to_hbm [thread:$0]  (%p1276_p5), %s1534_s10, 2048, %s1532_s14, %s1540_s15, %s1206_s8, %s1206_s8, %s1207_s9  }
 0x226 PF: > { %p1040_p1 = scmp.ge.s32.totalorder %s1202_s21, 2  ;;  %s825_s12 = sand.u32 1, %s1190_s18  }
 0x227   : > { %s826_s13 = scalar_lea.sflag [#allocation3], %s825_s12 }
 0x228   : > { %p1037_p2 = pnand %p1040_p1, %p1280_p6 }
 0x22a   : > { %1185 = dma.done.wait (!%p1037_p2), %s826_s13, 2048  }
 0x22b   : > { %1187 = vsyncadd (!%p1037_p2), %s826_s13, 4294965248  ;;  %p15_p3 = scmp.ge.s32.totalorder %s1263_s24, 4   ;;  %s1589_s18 = smov %s1194_s19 }
 0x22c   : > { %s1590_s19 = smov %s1198_s20  ;;  %s1591_s20 = smov %s1274_s27 }
 0x22d   : > { %s1592_s21 = smov %s1263_s24  ;;  %17 = sbr.rel (!%p15_p3) target bundleno = 3 (0x3), region = 75 }
 0x234   :  { %831 = vsyncpa [#allocation3], 1 }
 0x235   :  { %833 = vsyncpa [#allocation3 + $0x1], 1 }

</bundles_post_ra>
